<compile_context>
chip_gen: v6e
topology: v6e:2x2x1
jax: 0.10.0
libtpu: 0.0.40
codegen_flags: <defaults>
</compile_context>

<pallas_src>
import jax
import jax.numpy as jnp
from jax.experimental import pallas as pl
from jax.experimental.pallas import tpu as pltpu

_LANE = 128
_SUBLANE = 8
_MIN_SPLIT_BYTES = 1 << 20          # above this, force >= 2 grid steps (v7x TCs)
_F32_CHUNK_BYTES = 1 << 20          # per-chunk f32 working-set target for online LSE


def _tpu_params():
    """(target_block_bytes, vmem_limit_cap) keyed off the chip's VMEM size."""
    vmem_bytes = 128 * 1024 * 1024
    try:
        vmem_bytes = int(getattr(pltpu.get_tpu_info(), "vmem_capacity_bytes",
                                 vmem_bytes))
    except Exception:
        pass
    if vmem_bytes <= 80 * 1024 * 1024:
        # v7x-class: 64 MiB VMEM per TC, ~3.2 TB/s HBM -> bigger blocks, tight cap.
        return 6 * 1024 * 1024, 44 * 1024 * 1024
    # v5e / v6e class: 128 MiB VMEM.
    return 4 * 1024 * 1024, 80 * 1024 * 1024


def _make_lse_sigmoid_kernel(C, c_chunk):
    """Kernel: sigmoid(logsumexp over axis 1) of a (blk_b, C, ...) block.

    Online LSE over C in static chunks of `c_chunk` channels keeps the f32
    working set bounded regardless of C.  Works for both the lane-dense 4D
    block (blk_b, C, tile_rows, 128) and the flat 3D block (blk_b, C, tile_s).
    """
    def kernel(x_ref, o_ref):
        # First chunk: max in the native dtype (exact; saves a full f32 upcast
        # for bf16 inputs), upcast only for the exp().
        x0 = x_ref[...] if c_chunk >= C else x_ref[:, 0:c_chunk]
        m = jnp.max(x0, axis=1, keepdims=True).astype(jnp.float32)
        s = jnp.sum(jnp.exp(x0.astype(jnp.float32) - m), axis=1, keepdims=True)
        for c0 in range(c_chunk, C, c_chunk):
            hi = min(c0 + c_chunk, C)
            xc = x_ref[:, c0:hi]
            mc = jnp.max(xc, axis=1, keepdims=True).astype(jnp.float32)
            m_new = jnp.maximum(m, mc)
            s = s * jnp.exp(m - m_new) + jnp.sum(
                jnp.exp(xc.astype(jnp.float32) - m_new), axis=1, keepdims=True)
            m = m_new
        # sigmoid(m + log s) == s / (s + exp(-m)); drops a log and sigmoid's exp.
        o_ref[...] = (s / (s + jnp.exp(-m))).astype(o_ref.dtype)

    return kernel


def _choose_tiling(B, C, units, elem_bytes, target_bytes):
    """Pick (blk_b, tile_units); a 'unit' is one 128-lane spatial slab x all C."""
    unit_bytes = C * _LANE * elem_bytes
    per_batch = units * unit_bytes
    total = B * per_batch

    if per_batch >= target_bytes:
        # Spatial tiling, one batch element per block.
        blk_b = 1
        tile_units = max(1, target_bytes // unit_bytes)
        if tile_units >= units:
            tile_units = units
        elif units >= _SUBLANE:
            tile_units = max(_SUBLANE, (tile_units // _SUBLANE) * _SUBLANE)
        else:
            tile_units = units
    else:
        # Batch packing: full spatial extent per block, several batch elements.
        tile_units = units
        blk_b = min(B, max(1, target_bytes // max(per_batch, 1)))

    # Ensure >= 2 grid steps for non-tiny problems so both v7x TCs get work
    # (harmless on single-TC v5e/v6e).
    steps = pl.cdiv(B, blk_b) * pl.cdiv(units, tile_units)
    if steps < 2 and total > _MIN_SPLIT_BYTES:
        if B >= 2:
            blk_b = pl.cdiv(B, 2)
        elif units >= 2 * _SUBLANE:
            tile_units = max(_SUBLANE,
                             (pl.cdiv(units, 2) // _SUBLANE) * _SUBLANE)
    return blk_b, tile_units


def implicit_attention(x, dim=1, keepdim=True):
    """sigmoid(logsumexp(x, dim, keepdim)) for NCHW input, channel reduction."""
    assert x.ndim == 4, "expected NCHW input"
    if dim < 0:
        dim = x.ndim + dim
    assert dim == 1, "kernel specialized to channel reduction (dim=1)"

    B, C, H, W = x.shape
    S = H * W
    elem_bytes = x.dtype.itemsize
    target_bytes, vmem_cap = _tpu_params()

    lane_dense = (S % _LANE == 0)
    units = S // _LANE if lane_dense else pl.cdiv(S, _LANE)

    blk_b, tile_units = _choose_tiling(B, C, units, elem_bytes, target_bytes)
    grid = (pl.cdiv(B, blk_b), pl.cdiv(units, tile_units))

    # Channel chunk for the in-kernel online LSE (bounds the f32 working set).
    if lane_dense:
        chunk_elems = blk_b * tile_units * _LANE
        c_chunk = max(1, _F32_CHUNK_BYTES // (chunk_elems * 4))
        c_chunk = min(C, max(c_chunk, pl.cdiv(C, 8)))   # cap unroll at ~8 chunks
    else:
        # Flat path: C lives on the sublane axis; avoid sub-8 sublane slices.
        c_chunk = C

    kernel = _make_lse_sigmoid_kernel(C, c_chunk)

    # Explicit VMEM budget: double-buffered in/out blocks + chunk-bounded f32
    # temporaries + slack, capped per generation (44 MiB on v7x's 64 MiB VMEM).
    block_in = blk_b * C * tile_units * _LANE * elem_bytes
    block_out = blk_b * tile_units * _LANE * elem_bytes
    f32_work = blk_b * (min(C, c_chunk) + 4) * tile_units * _LANE * 4
    vmem_limit = int(min(vmem_cap,
                         max(8 * 1024 * 1024,
                             2 * (block_in + block_out) + 2 * f32_work
                             + 2 * 1024 * 1024)))

    cparams = pltpu.CompilerParams(
        dimension_semantics=("parallel", "parallel"),
        vmem_limit_bytes=vmem_limit,
    )

    # TODO(synk): for extremely large C (a (1, C, 8, 128) block no longer fits
    # VMEM), add C as a trailing "arbitrary" grid axis with running max /
    # rescaled-sum accumulators in VMEM scratch.

    if lane_dense:
        # Free reshape (no HBM copy): (B, C, S) -> (B, C, units, 128).
        x2 = x.reshape(B, C, units, _LANE)
        out = pl.pallas_call(
            kernel,
            out_shape=jax.ShapeDtypeStruct((B, 1, units, _LANE), x.dtype),
            grid_spec=pltpu.PrefetchScalarGridSpec(
                num_scalar_prefetch=0,
                grid=grid,
                in_specs=[pl.BlockSpec((blk_b, C, tile_units, _LANE),
                                       lambda b, r: (b, 0, r, 0))],
                out_specs=pl.BlockSpec((blk_b, 1, tile_units, _LANE),
                                       lambda b, r: (b, 0, r, 0)),
            ),
            compiler_params=cparams,
        )(x2)
        out = out.reshape(B, 1, H, W)
    else:
        # Ragged spatial extent: flat layout avoids materializing a padded copy
        # of x in HBM; the partial last spatial block is handled by Pallas
        # (garbage in OOB input lanes only affects discarded OOB output lanes).
        x2 = x.reshape(B, C, S)
        tile_s = tile_units * _LANE
        out = pl.pallas_call(
            kernel,
            out_shape=jax.ShapeDtypeStruct((B, 1, S), x.dtype),
            grid_spec=pltpu.PrefetchScalarGridSpec(
                num_scalar_prefetch=0,
                grid=grid,
                in_specs=[pl.BlockSpec((blk_b, C, tile_s),
                                       lambda b, r: (b, 0, r))],
                out_specs=pl.BlockSpec((blk_b, 1, tile_s),
                                       lambda b, r: (b, 0, r)),
            ),
            compiler_params=cparams,
        )(x2)
        out = out.reshape(B, 1, H, W)

    if not keepdim:
        out = jnp.squeeze(out, axis=1)
    return out


def _reference(x):
    return jax.nn.sigmoid(jax.scipy.special.logsumexp(x, axis=1, keepdims=True))


if __name__ == "__main__":
    key = jax.random.PRNGKey(0)

    # 1) Small baseline shape (lane-dense, single grid step).
    B, C, H, W = 2, 4, 16, 16
    x = jax.random.normal(key, (B, C, H, W), dtype=jnp.float32)
    y = jax.block_until_ready(implicit_attention(x, dim=1, keepdim=True))
    ref = _reference(x)
    assert y.shape == (B, 1, H, W)
    assert jnp.allclose(y, ref, atol=1e-5, rtol=1e-5), "mismatch vs reference"

    # 2) Larger lane-dense shape: exercises the >=2-step split and chunked-C LSE.
    x_big = jax.random.normal(jax.random.PRNGKey(1), (2, 16, 128, 130),
                              dtype=jnp.float32)
    y_big = jax.block_until_ready(implicit_attention(x_big))
    ref_big = _reference(x_big)
    assert y_big.shape == ref_big.shape
    assert jnp.allclose(y_big, ref_big, atol=1e-5, rtol=1e-5), "tiled mismatch"

    # 3) Ragged spatial extent (H*W % 128 != 0): no-pad flat path, partial block.
    x_rag = jax.random.normal(jax.random.PRNGKey(2), (2, 4, 16, 10),
                              dtype=jnp.float32)
    y_rag = jax.block_until_ready(implicit_attention(x_rag))
    ref_rag = _reference(x_rag)
    assert y_rag.shape == ref_rag.shape
    assert jnp.allclose(y_rag, ref_rag, atol=1e-5, rtol=1e-5), "ragged mismatch"

    # 4) Batch-heavy, small-spatial shape: exercises batch packing (blk_b > 1).
    x_bat = jax.random.normal(jax.random.PRNGKey(3), (64, 4, 16, 16),
                              dtype=jnp.float32)
    y_bat = jax.block_until_ready(implicit_attention(x_bat))
    ref_bat = _reference(x_bat)
    assert y_bat.shape == ref_bat.shape
    assert jnp.allclose(y_bat, ref_bat, atol=1e-5, rtol=1e-5), "batched mismatch"

    print("KERNEL_OK")
</pallas_src>

<mosaic_0001>
module attributes {stable_mosaic.version = 11 : i64} {
  func.func @kernel(%arg0: i32, %arg1: i32, %arg2: memref<2x4x2x128xf32, #tpu.memory_space<vmem>>, %arg3: memref<2x1x2x128xf32, #tpu.memory_space<vmem>>) attributes {dimension_semantics = [#tpu.dimension_semantics<parallel>, #tpu.dimension_semantics<parallel>], iteration_bounds = array<i64: 1, 1>, scalar_prefetch = 0 : i64, scratch_operands = 0 : i64, tpu.core_type = #tpu.core_type<tc>, window_params = [{transform_indices = @transform_0, window_bounds = array<i64: 2, 4, 2, 128>}, {transform_indices = @transform_1, window_bounds = array<i64: 2, 1, 2, 128>}]} {
    %c0 = arith.constant 0 : index
    %c0_0 = arith.constant 0 : index
    %c0_1 = arith.constant 0 : index
    %c0_2 = arith.constant 0 : index
    %0 = vector.load %arg2[%c0, %c0_0, %c0_1, %c0_2] : memref<2x4x2x128xf32, #tpu.memory_space<vmem>>, vector<2x4x2x128xf32>
    %cst = arith.constant dense<0xFF800000> : vector<2x2x128xf32>
    %1 = vector.multi_reduction <maximumf>, %0, %cst [1] : vector<2x4x2x128xf32> to vector<2x2x128xf32>
    %2 = vector.shape_cast %1 : vector<2x2x128xf32> to vector<2x1x2x128xf32>
    %3 = vector.broadcast %2 : vector<2x1x2x128xf32> to vector<2x4x2x128xf32>
    %4 = arith.subf %0, %3 : vector<2x4x2x128xf32>
    %5 = math.exp %4 : vector<2x4x2x128xf32>
    %cst_3 = arith.constant dense<0.000000e+00> : vector<2x2x128xf32>
    %6 = vector.multi_reduction <add>, %5, %cst_3 [1] : vector<2x4x2x128xf32> to vector<2x2x128xf32>
    %7 = vector.shape_cast %6 : vector<2x2x128xf32> to vector<2x1x2x128xf32>
    %cst_4 = arith.constant 0.000000e+00 : f32
    %8 = vector.broadcast %cst_4 : f32 to vector<2x1x2x128xf32>
    %9 = arith.subf %8, %2 : vector<2x1x2x128xf32>
    %10 = math.exp %9 : vector<2x1x2x128xf32>
    %11 = arith.addf %7, %10 : vector<2x1x2x128xf32>
    %12 = arith.divf %7, %11 : vector<2x1x2x128xf32>
    %c0_5 = arith.constant 0 : index
    %c0_6 = arith.constant 0 : index
    %c0_7 = arith.constant 0 : index
    %c0_8 = arith.constant 0 : index
    %13 = vector.load %arg3[%c0_5, %c0_6, %c0_7, %c0_8] : memref<2x1x2x128xf32, #tpu.memory_space<vmem>>, vector<2x1x2x128xf32>
    tpu.vector_store %arg3[%c0_5, %c0_6, %c0_7, %c0_8], %12 {strides = array<i32>} : memref<2x1x2x128xf32, #tpu.memory_space<vmem>>, vector<2x1x2x128xf32>,
    return
  }
  func.func @transform_0(%arg0: i32, %arg1: i32) -> (i32, i32, i32, i32) {
    %c0_i32 = arith.constant 0 : i32
    %c0_i32_0 = arith.constant 0 : i32
    %c0_i32_1 = arith.constant 0 : i32
    return %arg0, %c0_i32, %arg1, %c0_i32_0 : i32, i32, i32, i32
  }
  func.func @transform_1(%arg0: i32, %arg1: i32) -> (i32, i32, i32, i32) {
    %c0_i32 = arith.constant 0 : i32
    %c0_i32_0 = arith.constant 0 : i32
    %c0_i32_1 = arith.constant 0 : i32
    return %arg0, %c0_i32, %arg1, %c0_i32_0 : i32, i32, i32, i32
  }
}

</mosaic_0001>

<bundles_post_ra>
// kernel: tpu_custom_call.1
= control target key start
LH: loop header
LB: loop body
LE: loop exit
PB: predicated region body
PF: predicated region fallthrough
CT: control target
= control target key end

     0   :  { %6 = vsyncpa [#allocation3], 0  ;;  %s229_s0 = inlined_call_operand.hbm [shape: f32[2,4,2,128], index: 0, kind: input, shape index: {}]   ;;  %s230_s1 = inlined_call_operand.hbm [shape: f32[2,1,2,128], index: 1, kind: output, shape index: {}]  }
   0x1   :  { %7 = vsyncpa [#allocation4], 0  ;;  %s187_s6 = smov [#allocation2]  }
   0x2   :  { %s13_s7 = sshll.u32 %s187_s6, 4  ;;  %s14_s7 = int_to_ptr.vmem [resolvable:$true] %s13_s7 }
   0x3   :  { %s151_s8 = scalar_lea.vmem %s14_s7, 256  ;;  %p156_p1 = scmp.lt.s32.totalorder %s14_s7, %s14_s7 }
   0x4   :  { %p152_p0 = scmp.ne.s32.totalorder %s14_s7, %s151_s8  ;;  %p157_p2 = scmp.lt.s32.totalorder %s151_s8, %s151_s8 }
   0x6   :  { %p158_p3 = por %p157_p2, %p156_p1 }
   0x8   :  { %p159_p4 = pnand %p158_p3, %p152_p0 }
   0xa   :  { %162 = shalt.err (!%p159_p4)
}
   0xb   :  { %s188_s9 = smov 32   ;;  %s189_s10 = smov 2  }
   0xc   :  { %19 = dma.hbm_to_vmem [thread:$0]  %s229_s0, 256, %s14_s7, [#allocation3], %s188_s9, %s188_s9, %s189_s10  }
   0xd   :  { %183 = dma.done.wait [#allocation3], 256  }
   0xe   :  { %184 = vsyncadd [#allocation3], 4294967040  ;;  %vm31_vm0 = vcmask 1041408   ;;  %v23_v0 = vld [vmem:[#allocation2] sm:$0x3]  ;;  %s190_s0 = smov [#allocation5]  }
   0xf   :  { %v24_v1 = vld [vmem:[#allocation2 + $0x2] sm:$0x3]  ;;  %v25_v2 = vld [vmem:[#allocation2 + $0x4] sm:$0x3]  ;;  %v26_v3 = vld [vmem:[#allocation2 + $0x6] sm:$0x3] }
  0x10   :  { %v32_v4 = vsel %vm31_vm0, %v23_v0, -inf  ;;  %v33_v5 = vsel %vm31_vm0, %v24_v1, -inf  ;;  %v34_v6 = vsel %vm31_vm0, %v25_v2, -inf  ;;  %v36_v8 = vsel %vm31_vm0, %v26_v3, -inf  ;;  %v27_v9 = vld [vmem:[#allocation2 + $0x8] sm:$0x3] }
  0x11   :  { %v35_v7 = vmax.f32 %v32_v4, %v34_v6  ;;  %v28_v10 = vld [vmem:[#allocation2 + $0xa] sm:$0x3]  ;;  %v37_v11 = vmax.f32 %v33_v5, %v36_v8  ;;  %v29_v12 = vld [vmem:[#allocation2 + $0xc] sm:$0x3]  ;;  %v30_v13 = vld [vmem:[#allocation2 + $0xe] sm:$0x3] }
  0x12   :  { %v39_v14 = vsel %vm31_vm0, %v27_v9, -inf  ;;  %v40_v15 = vsel %vm31_vm0, %v28_v10, -inf  ;;  %v41_v16 = vsel %vm31_vm0, %v29_v12, -inf  ;;  %v43_v17 = vsel %vm31_vm0, %v30_v13, -inf  ;;  %s103_s13 = sshll.u32 %s190_s0, 4  ;;  %s104_s13 = int_to_ptr.vmem [resolvable:$true] %s103_s13 }
  0x13   :  { %v38_v18 = vmax.f32 %v35_v7, %v37_v11  ;;  %v42_v19 = vmax.f32 %v39_v14, %v41_v16  ;;  %v44_v20 = vmax.f32 %v40_v15, %v43_v17  ;;  %s163_s14 = scalar_lea.vmem %s104_s13, 64  ;;  %p168_p6 = scmp.lt.s32.totalorder %s104_s13, %s104_s13 }
  0x14   :  { %p164_p5 = scmp.ne.s32.totalorder %s104_s13, %s163_s14  ;;  %p169_p7 = scmp.lt.s32.totalorder %s163_s14, %s163_s14 }
  0x15   :  { %v46_v21 = vsub.f32 %v23_v0, %v38_v18  ;;  %v47_v22 = vsub.f32 %v24_v1, %v38_v18  ;;  %v48_v23 = vsub.f32 %v25_v2, %v38_v18  ;;  %v49_v24 = vsub.f32 %v26_v3, %v38_v18 }
  0x16   :  { %v84_v25 = vsub.f32 0.0, %v38_v18  ;;  %v45_v26 = vmax.f32 %v42_v19, %v44_v20  ;;  %p170_p8 = por %p169_p7, %p168_p6 }
  0x17   :  { %v54_v27 = vmul.f32 1.442695, %v46_v21  ;;  %v56_v28 = vmul.f32 1.442695, %v47_v22  ;;  %v58_v29 = vmul.f32 1.442695, %v48_v23 }
  0x18   :  { %v60_v30 = vmul.f32 1.442695, %v49_v24  ;;  %v50_v31 = vsub.f32 %v27_v9, %v45_v26  ;;  %v51_v32 = vsub.f32 %v28_v10, %v45_v26  ;;  %v86_v33 = vmul.f32 1.442695, %v84_v25  ;;  %p171_p9 = pnand %p170_p8, %p164_p5 }
  0x19   :  { %119 = vpow2.f32 %v54_v27  ;;  %v52_v34 = vsub.f32 %v29_v12, %v45_v26  ;;  %v53_v35 = vsub.f32 %v30_v13, %v45_v26  ;;  %v85_v39 = vsub.f32 0.0, %v45_v26 }
  0x1a   :  { %121 = vpow2.f32 %v56_v28  ;;  %v62_v36 = vmul.f32 1.442695, %v50_v31  ;;  %v64_v37 = vmul.f32 1.442695, %v51_v32 }
  0x1b   :  { %123 = vpow2.f32 %v58_v29  ;;  %v66_v38 = vmul.f32 1.442695, %v52_v34  ;;  %v68_v40 = vmul.f32 1.442695, %v53_v35  ;;  %v88_v41 = vmul.f32 1.442695, %v85_v39 }
  0x1c   :  { %125 = vpow2.f32 %v60_v30 }
  0x1d   :  { %127 = vpow2.f32 %v86_v33 }
  0x1e   :  { %129 = vpow2.f32 %v62_v36 }
  0x1f   :  { %131 = vpow2.f32 %v64_v37 }
  0x20   :  { %133 = vpow2.f32 %v66_v38 }
  0x21   :  { %135 = vpow2.f32 %v68_v40 }
  0x22   :  { %137 = vpow2.f32 %v88_v41 }
  0x26   :  { %v120_v42 = vpop.eup %119 }
  0x27   :  { %v122_v43 = vpop.eup %121  ;;  %v70_v44 = vsel %vm31_vm0, %v120_v42, 0.0 }
  0x28   :  { %v124_v45 = vpop.eup %123  ;;  %v71_v46 = vsel %vm31_vm0, %v122_v43, 0.0 }
  0x29   :  { %v126_v47 = vpop.eup %125  ;;  %v72_v48 = vadd.f32 %v71_v46, %v70_v44  ;;  %v73_v49 = vsel %vm31_vm0, %v124_v45, 0.0 }
  0x2a   :  { %v128_v50 = vpop.eup %127  ;;  %v75_v51 = vsel %vm31_vm0, %v126_v47, 0.0 }
  0x2b   :  { %v130_v52 = vpop.eup %129  ;;  %v74_v53 = vadd.f32 %v73_v49, %v72_v48 }
  0x2c   :  { %v132_v54 = vpop.eup %131  ;;  %v77_v55 = vsel %vm31_vm0, %v130_v52, 0.0 }
  0x2d   :  { %v134_v56 = vpop.eup %133  ;;  %v76_v57 = vadd.f32 %v75_v51, %v74_v53  ;;  %v78_v58 = vsel %vm31_vm0, %v132_v54, 0.0 }
  0x2e   :  { %v136_v59 = vpop.eup %135  ;;  %v79_v60 = vadd.f32 %v78_v58, %v77_v55  ;;  %v80_v61 = vsel %vm31_vm0, %v134_v56, 0.0 }
  0x2f   :  { %v90_v62 = vadd.f32 %v128_v50, %v76_v57  ;;  %v82_v63 = vsel %vm31_vm0, %v136_v59, 0.0  ;;  %v138_v1 = vpop.eup %137 }
  0x30   :  { %v81_v0 = vadd.f32 %v80_v61, %v79_v60 }
  0x31   :  { %139 = vrcp.f32 %v90_v62 }
  0x32   :  { %v83_v2 = vadd.f32 %v82_v63, %v81_v0 }
  0x34   :  { %v91_v3 = vadd.f32 %v138_v1, %v83_v2 }
  0x36   :  { %141 = vrcp.f32 %v91_v3 }
  0x3e   :  { %v140_v4 = vpop.eup %139 }
  0x3f   :  { %v93_v5 = vmul.f32 %v140_v4, %v76_v57 }
  0x41   :  { %96 = vst [vmem:[#allocation5] sm:$0x3] %v93_v5 }
  0x43   :  { %v142_v6 = vpop.eup %141 }
  0x44   :  { %v95_v7 = vmul.f32 %v142_v6, %v83_v2 }
  0x46   :  { %97 = vst [vmem:[#allocation5 + $0x2] sm:$0x3] %v95_v7 }
  0x47   :  { %174 = shalt.err (!%p171_p9)
}
  0x48   :  { %109 = dma.vmem_to_hbm [thread:$0]  %s104_s13, 64, %s230_s1, [#allocation4], %s188_s9, %s188_s9, %s189_s10  }
  0x49   :  { %185 = dma.done.wait [#allocation4], 64  }
  0x4a   :  { %186 = vsyncadd [#allocation4], 4294967232 }
  0x4b   :  { %113 = vsyncpa [#allocation3], 1 }
  0x4c   :  { %114 = vsyncpa [#allocation4], 1 }

</bundles_post_ra>
